<compile_context>
chip_gen: v5e
topology: v5e:2x2
jax: 0.10.0
libtpu: 0.0.40
codegen_flags: <defaults>
</compile_context>

<pallas_src>
import functools

import jax
import jax.numpy as jnp
from jax.experimental import pallas as pl
from jax.experimental.pallas import tpu as pltpu


def se_block_kernel(x_ref, w1_ref, w2_ref, o_ref, *, inv_len):
    # x_ref / o_ref: (TB, C, L) batch tile; w1/w2 resident across the grid.

    # --- squeeze: global average pool over length (f32 accumulation; the
    #     widened values are consumed by the reduce, no f32 tile copy is kept).
    y = jnp.sum(x_ref[...], axis=-1, dtype=jnp.float32) * inv_len       # (TB, C)

    # --- excitation: FC -> ReLU -> FC -> sigmoid (tiny matmuls, f32 acc) ---
    h = jnp.maximum(
        jnp.dot(y, w1_ref[...].astype(jnp.float32),
                preferred_element_type=jnp.float32), 0.0)
    z = jnp.dot(h, w2_ref[...].astype(jnp.float32),
                preferred_element_type=jnp.float32)
    s = pl.reciprocal(1.0 + jnp.exp(-z), approx=False)                  # (TB, C)

    # --- scale: re-read x and multiply in the input dtype (one load, one mul,
    #     one store per vreg; gate broadcast along the length/lane axis).
    o_ref[...] = x_ref[...] * s.astype(o_ref.dtype)[:, :, None]


def _vmem_budget_bytes():
    phys = 64 * 1024 * 1024  # conservative fallback (v7x per-core VMEM)
    try:
        info = pltpu.get_tpu_info()
        for name in ("vmem_capacity_bytes", "vmem_bytes", "vmem_size_bytes"):
            v = getattr(info, name, None)
            if v:
                phys = int(v)
                break
    except Exception:
        pass
    # ~75% of physical, capped: 48 MiB on v7x (64 MiB), 96 MiB on v5e/v6e (128 MiB).
    return min((phys * 3) // 4, 100 * 1024 * 1024)


def se_block(x, w1, w2):
    """x: [batch, channels, length]; w1: [c, c//r]; w2: [c//r, c] (pre-transposed)."""
    b, c, length = x.shape
    c_red = w1.shape[1]

    vmem_limit = _vmem_budget_bytes()
    plane_bytes = c * length * x.dtype.itemsize            # one batch plane of x
    weight_bytes = (w1.size * w1.dtype.itemsize + w2.size * w2.dtype.itemsize)

    # Per grid step the pipeline holds 2 double-buffered input tiles, 2
    # double-buffered output tiles, plus ~one f32-sized temporary per plane.
    per_plane_cost = 4 * plane_bytes + c * length * 4
    budget = vmem_limit - 2 * weight_bytes - (2 << 20)     # headroom for scratch
    if budget < per_plane_cost:
        # TODO(synk): add an L-tiled two-phase (pool pass + scale pass) fallback
        # for shapes where one (c, length) plane does not fit in VMEM.
        raise ValueError(
            f"SEBlock plane (c={c}, L={length}) needs ~{per_plane_cost} bytes of "
            f"VMEM per grid step, exceeding the budget of {budget} bytes; an "
            "L-tiled fallback is not implemented.")

    tb = max(1, budget // per_plane_cost)
    tb = min(tb, b)
    # Keep >=4 grid steps when the batch allows (>=2 per TensorCore on v7x
    # megacore so each core double-buffers); >=2 steps otherwise.
    if b >= 4:
        tb = min(tb, -(-b // 4))
    elif b >= 2:
        tb = min(tb, -(-b // 2))
    # Make tb a divisor of b: every block is full, no host-side batch padding
    # and no partial trailing block.
    while b % tb != 0:
        tb -= 1
    grid = (b // tb,)

    kernel = functools.partial(se_block_kernel, inv_len=1.0 / length)

    return pl.pallas_call(
        kernel,
        out_shape=jax.ShapeDtypeStruct((b, c, length), x.dtype),
        grid_spec=pltpu.PrefetchScalarGridSpec(
            num_scalar_prefetch=0,
            grid=grid,
            in_specs=[
                pl.BlockSpec((tb, c, length), lambda i: (i, 0, 0)),  # x (streamed)
                pl.BlockSpec((c, c_red), lambda i: (0, 0)),          # W1 (resident)
                pl.BlockSpec((c_red, c), lambda i: (0, 0)),          # W2 (resident)
            ],
            out_specs=pl.BlockSpec((tb, c, length), lambda i: (i, 0, 0)),
        ),
        compiler_params=pltpu.CompilerParams(
            dimension_semantics=("parallel",),
            vmem_limit_bytes=vmem_limit,
        ),
    )(x, w1, w2)


def reference(x, w1, w2):
    xf = x.astype(jnp.float32)
    y = jnp.mean(xf, axis=-1)                      # (b, c)
    h = jnp.maximum(y @ w1, 0.0)
    z = h @ w2
    s = 1.0 / (1.0 + jnp.exp(-z))
    return (xf * s[:, :, None]).astype(x.dtype)


if __name__ == "__main__":
    batch, channels, length, reduction = 4, 64, 16, 16
    c_red = channels // reduction                  # = 4

    key = jax.random.PRNGKey(0)
    kx, k1, k2 = jax.random.split(key, 3)

    x = jax.random.normal(kx, (batch, channels, length), dtype=jnp.float32)

    # torch Linear default init scale U(-1/sqrt(fan_in), 1/sqrt(fan_in)); bias=False.
    # Weights stored pre-transposed: w1 = W_down.T (c, c//r), w2 = W_up.T (c//r, c).
    lim1 = 1.0 / (channels ** 0.5)
    lim2 = 1.0 / (c_red ** 0.5)
    w1 = jax.random.uniform(k1, (channels, c_red), jnp.float32, -lim1, lim1)
    w2 = jax.random.uniform(k2, (c_red, channels), jnp.float32, -lim2, lim2)

    out = jax.block_until_ready(se_block(x, w1, w2))

    ref = reference(x, w1, w2)
    assert out.shape == (batch, channels, length)
    assert jnp.allclose(out, ref, atol=1e-5, rtol=1e-5), "mismatch vs reference"

    print("KERNEL_OK")
</pallas_src>

<mosaic_0001>
module attributes {stable_mosaic.version = 11 : i64} {
  func.func @se_block_kernel(%arg0: i32, %arg1: memref<1x64x16xf32, #tpu.memory_space<vmem>>, %arg2: memref<64x4xf32, #tpu.memory_space<vmem>>, %arg3: memref<4x64xf32, #tpu.memory_space<vmem>>, %arg4: memref<1x64x16xf32, #tpu.memory_space<vmem>>) attributes {dimension_semantics = [#tpu.dimension_semantics<parallel>], iteration_bounds = array<i64: 4>, scalar_prefetch = 0 : i64, scratch_operands = 0 : i64, tpu.core_type = #tpu.core_type<tc>, window_params = [{transform_indices = @transform_0, window_bounds = array<i64: 1, 64, 16>}, {pipeline_mode = #tpu.pipeline_mode<synchronous>, transform_indices = @transform_1, window_bounds = array<i64: 64, 4>}, {pipeline_mode = #tpu.pipeline_mode<synchronous>, transform_indices = @transform_2, window_bounds = array<i64: 4, 64>}, {transform_indices = @transform_3, window_bounds = array<i64: 1, 64, 16>}]} {
    %c0 = arith.constant 0 : index
    %c0_0 = arith.constant 0 : index
    %c0_1 = arith.constant 0 : index
    %0 = vector.load %arg1[%c0, %c0_0, %c0_1] : memref<1x64x16xf32, #tpu.memory_space<vmem>>, vector<1x64x16xf32>
    %cst = arith.constant dense<0.000000e+00> : vector<1x64xf32>
    %1 = vector.multi_reduction <add>, %0, %cst [2] : vector<1x64x16xf32> to vector<1x64xf32>
    %cst_2 = arith.constant 6.250000e-02 : f32
    %2 = vector.broadcast %cst_2 : f32 to vector<1x64xf32>
    %3 = arith.mulf %1, %2 : vector<1x64xf32>
    %c0_3 = arith.constant 0 : index
    %c0_4 = arith.constant 0 : index
    %4 = vector.load %arg2[%c0_3, %c0_4] : memref<64x4xf32, #tpu.memory_space<vmem>>, vector<64x4xf32>
    %cst_5 = arith.constant dense<0.000000e+00> : vector<1x4xf32>
    %5 = tpu.matmul %3, %4, %cst_5 {dimension_numbers = #tpu.dot_dimension_numbers<[1], [0], [0], [1], [0, 0, 1, 1], [], []>} : vector<1x64xf32>, vector<64x4xf32>, vector<1x4xf32> -> vector<1x4xf32>
    %cst_6 = arith.constant 0.000000e+00 : f32
    %6 = vector.broadcast %cst_6 : f32 to vector<1x4xf32>
    %7 = arith.maximumf %5, %6 : vector<1x4xf32>
    %c0_7 = arith.constant 0 : index
    %c0_8 = arith.constant 0 : index
    %8 = vector.load %arg3[%c0_7, %c0_8] : memref<4x64xf32, #tpu.memory_space<vmem>>, vector<4x64xf32>
    %cst_9 = arith.constant dense<0.000000e+00> : vector<1x64xf32>
    %9 = tpu.matmul %7, %8, %cst_9 {dimension_numbers = #tpu.dot_dimension_numbers<[1], [0], [0], [1], [0, 0, 1, 1], [], []>} : vector<1x4xf32>, vector<4x64xf32>, vector<1x64xf32> -> vector<1x64xf32>
    %cst_10 = arith.constant 0.000000e+00 : f32
    %10 = vector.broadcast %cst_10 : f32 to vector<1x64xf32>
    %11 = arith.subf %10, %9 : vector<1x64xf32>
    %12 = math.exp %11 : vector<1x64xf32>
    %cst_11 = arith.constant 1.000000e+00 : f32
    %13 = vector.broadcast %cst_11 : f32 to vector<1x64xf32>
    %14 = arith.addf %13, %12 : vector<1x64xf32>
    %15 = tpu.reciprocal %14 : vector<1x64xf32> -> vector<1x64xf32>
    %c0_12 = arith.constant 0 : index
    %c0_13 = arith.constant 0 : index
    %c0_14 = arith.constant 0 : index
    %16 = vector.load %arg1[%c0_12, %c0_13, %c0_14] : memref<1x64x16xf32, #tpu.memory_space<vmem>>, vector<1x64x16xf32>
    %17 = vector.shape_cast %15 : vector<1x64xf32> to vector<1x64x1xf32>
    %18 = vector.broadcast %17 : vector<1x64x1xf32> to vector<1x64x16xf32>
    %19 = arith.mulf %16, %18 : vector<1x64x16xf32>
    %c0_15 = arith.constant 0 : index
    %c0_16 = arith.constant 0 : index
    %c0_17 = arith.constant 0 : index
    %20 = vector.load %arg4[%c0_15, %c0_16, %c0_17] : memref<1x64x16xf32, #tpu.memory_space<vmem>>, vector<1x64x16xf32>
    tpu.vector_store %arg4[%c0_15, %c0_16, %c0_17], %19 {strides = array<i32>} : memref<1x64x16xf32, #tpu.memory_space<vmem>>, vector<1x64x16xf32>,
    return
  }
  func.func @transform_0(%arg0: i32) -> (i32, i32, i32) {
    %c0_i32 = arith.constant 0 : i32
    %c0_i32_0 = arith.constant 0 : i32
    %c0_i32_1 = arith.constant 0 : i32
    return %arg0, %c0_i32, %c0_i32_0 : i32, i32, i32
  }
  func.func @transform_1(%arg0: i32) -> (i32, i32) {
    %c0_i32 = arith.constant 0 : i32
    %c0_i32_0 = arith.constant 0 : i32
    %c0_i32_1 = arith.constant 0 : i32
    return %c0_i32, %c0_i32_0 : i32, i32
  }
  func.func @transform_2(%arg0: i32) -> (i32, i32) {
    %c0_i32 = arith.constant 0 : i32
    %c0_i32_0 = arith.constant 0 : i32
    %c0_i32_1 = arith.constant 0 : i32
    return %c0_i32, %c0_i32_0 : i32, i32
  }
  func.func @transform_3(%arg0: i32) -> (i32, i32, i32) {
    %c0_i32 = arith.constant 0 : i32
    %c0_i32_0 = arith.constant 0 : i32
    %c0_i32_1 = arith.constant 0 : i32
    return %arg0, %c0_i32, %c0_i32_0 : i32, i32, i32
  }
}

</mosaic_0001>

<bundles_post_ra>
// kernel: tpu_custom_call.1
= control target key start
LH: loop header
LB: loop body
LE: loop exit
PB: predicated region body
PF: predicated region fallthrough
CT: control target
= control target key end

     0   :  { %s515_s12 = smov 0   ;;  %s614_s0 = inlined_call_operand.vmem [shape: f32[4,64,16], index: 0, kind: input, shape index: {}]   ;;  %s615_s1 = inlined_call_operand.vmem [shape: f32[64,4], index: 1, kind: input, shape index: {}]   ;;  %s616_s2 = inlined_call_operand.vmem [shape: f32[4,64], index: 2, kind: input, shape index: {}]   ;;  %s617_s3 = inlined_call_operand.vmem [shape: f32[4,64,16], index: 3, kind: output, shape index: {}]  }
   0x1 LB: > { %s450_s13 = sadd.s32 4294967295, %s493_s12   ;;  %p454_p0 = scmp.ge.s32.totalorder %s493_s12, 1  ;;  %s493_s12 = sphi %s515_s12, %s13_s12  }
   0x2   : > { %p137_p1 = scmp.lt.s32.totalorder %s493_s12, 5 }
   0x4   : > { %p138_p2 = pnand %p454_p0, %p137_p1 }
   0x5   : > { %p161_p3 = scmp.lt.s32.totalorder (!%p138_p2), %s450_s13, 3 }
   0x6   : > { %141 = sbr.rel (%p138_p2) target bundleno = 590 (0x24e), region = 32 }
   0xb   : > { %s619_s13 = smov (!%p161_p3, %s450_s13), 3  ;;  %vm179_vm0 = vcmask 130048   ;;  %v219_v16 = vld [vmem:[%s615_s1 + $0x38] sm:$0xff]  ;;  %v218_v17 = vld [vmem:[%s615_s1 + $0x30] sm:$0xff]  ;;  %v217_v18 = vld [vmem:[%s615_s1 + $0x28] sm:$0xff]  ;;  %v228_v24 = vlaneseq  ;;  %vm233_vm1 = vcmask 130112  }
   0xc   : > { %s464_s14 = sshll.u32 %s619_s13, 6  ;;  %270 = vmatpush.msra.mxu0 %v219_v16  ;;  %v216_v19 = vld [vmem:[%s615_s1 + $0x20] sm:$0xff]  ;;  %v215_v20 = vld [vmem:[%s615_s1 + $0x18] sm:$0xff]  ;;  %v214_v21 = vld [vmem:[%s615_s1 + $0x10] sm:$0xff]  ;;  %vm237_vm2 = vcmask 195712   ;;  %vm241_vm3 = vcmask 261312  }
   0xd   : > { %s165_s17 = scalar_lea.vmem %s614_s0, %s464_s14  ;;  %v213_v22 = vld [vmem:[%s615_s1 + $0x8] sm:$0xff]  ;;  %v212_v23 = vld [vmem:[%s615_s1] sm:$0xff]  ;;  %v229_v28 = vand.u32 127, %v228_v24  ;;  %vm245_vm4 = vcmask 326912   ;;  %vm249_vm5 = vcmask 392512   ;;  %vm253_vm6 = vcmask 458112   ;;  %s170_s11 = scalar_lea.vmem %s617_s3, %s464_s14 }
   0xe   : > { %v531_v0 = vld [vmem:[%s165_s17] sm:$0xff]  ;;  %v533_v1 = vld [vmem:[%s165_s17 + $0x10] sm:$0xff]  ;;  %v543_v6 = vld [vmem:[%s165_s17 + $0x8] sm:$0xff]  ;;  %271 = vmatpush.msra.mxu0 %v218_v17  ;;  %vm257_vm7 = vcmask 523712   ;;  %vm259_vm8 = vcmask 523264   ;;  %vm288_vm9 = vcmask 1043456  }
   0xf   : > { %v535_v2 = vld [vmem:[%s165_s17 + $0x20] sm:$0xff]  ;;  %v180_v3 = vsel %vm179_vm0, %v531_v0, 0.0  ;;  %v186_v4 = vsel %vm179_vm0, %v533_v1, 0.0  ;;  %v545_v7 = vld [vmem:[%s165_s17 + $0x18] sm:$0xff]  ;;  %v547_v8 = vld [vmem:[%s165_s17 + $0x28] sm:$0xff]  ;;  %v183_v9 = vsel %vm179_vm0, %v543_v6, 0.0 }
  0x10   : > { %v192_v5 = vsel %vm179_vm0, %v535_v2, 0.0  ;;  %181 = vadd.xlane.f32.xlu0 %v180_v3  ;;  %187 = vadd.xlane.f32.xlu1 %v186_v4  ;;  %v189_v10 = vsel %vm179_vm0, %v545_v7, 0.0  ;;  %v195_v11 = vsel %vm179_vm0, %v547_v8, 0.0  ;;  %v555_v12 = vld [vmem:[%s165_s17 + $0x30] sm:$0xff]  ;;  %v557_v13 = vld [vmem:[%s165_s17 + $0x38] sm:$0xff]  ;;  %v231_v30 = vadd.s32 4294967288, %v229_v28 }
  0x11   : > { %193 = vadd.xlane.f32.xlu2 %v192_v5  ;;  %v198_v14 = vsel %vm179_vm0, %v555_v12, 0.0  ;;  %v201_v15 = vsel %vm179_vm0, %v557_v13, 0.0  ;;  %272 = vmatpush.msra.mxu0 %v217_v18  ;;  %v239_v31 = vadd.s32 4294967272, %v229_v28  ;;  %v235_v32 = vadd.s32 4294967280, %v229_v28  ;;  %v283_v3 = vld [vmem:[%s616_s2] sm:$0xf] }
  0x12   : > { %v243_v39 = vadd.s32 4294967264, %v229_v28  ;;  %v247_v45 = vadd.s32 4294967256, %v229_v28  ;;  %v251_v51 = vadd.s32 4294967248, %v229_v28  ;;  %v255_v52 = vadd.s32 4294967240, %v229_v28  ;;  %460 = vmatpush.msk.msra.mxu1 %vm288_vm9, %v283_v3 }
  0x13   : > { %273 = vmatpush.msra.mxu0 %v216_v19  ;;  %vm284_vm10 = vcmask 31744  }
  0x15   : > { %274 = vmatpush.msra.mxu0 %v215_v20 }
  0x17   : > { %275 = vmatpush.msra.mxu0 %v214_v21 }
  0x18   : > { %184 = vadd.xlane.f32.xlu0 %v183_v9  ;;  %190 = vadd.xlane.f32.xlu1 %v189_v10  ;;  %v332_v9 = vshrl.u32 %v228_v24, 7 }
  0x19   : > { %196 = vadd.xlane.f32.xlu2 %v195_v11  ;;  %276 = vmatpush.msra.mxu0 %v213_v22 }
  0x1a   : > { %474 = vset.pattern.permute.xlu2 %v332_v9  ;;  %v345_v10 = vadd.s32 16, %v332_v9  ;;  %v339_v11 = vadd.s32 8, %v332_v9 }
  0x1b   : > { %277 = vmatpush.msra.mxu0 %v212_v23 }
  0x1c   : > { %476 = vset.pattern.permute.xlu1 %v345_v10  ;;  %475 = vset.pattern.permute.xlu0 %v339_v11 }
  0x20   : > { %199 = vadd.xlane.f32.xlu0 %v198_v14  ;;  %202 = vadd.xlane.f32.xlu1 %v201_v15 }
  0x83   : > { %v182_v25 = vpop.xlane.xlu0 %181  ;;  %v188_v26 = vpop.xlane.xlu1 %187 }
  0x84   : > { %v194_v27 = vpop.xlane.xlu2 %193  ;;  %v204_v29 = vmul.f32 0.0625, %v182_v25  ;;  %v206_v33 = vmul.f32 0.0625, %v188_v26 }
  0x85   : > { %v208_v41 = vmul.f32 0.0625, %v194_v27 }
  0x86   : > { %v230_v40 = vperm.slane %v204_v29, %v229_v28  ;;  %v236_v44 = vperm.slane %v206_v33, %v235_v32  ;;  %v375_v32 = vadd.s32 56, %v332_v9  ;;  %v357_v33 = vadd.s32 32, %v332_v9 }
  0x87   : > { %v244_v49 = vperm.slane %v208_v41, %v243_v39 }
  0x8b   : > { %v185_v34 = vpop.xlane.xlu0 %184  ;;  %v191_v35 = vpop.xlane.xlu1 %190 }
  0x8c   : > { %v205_v36 = vmul.f32 0.0625, %v185_v34  ;;  %v207_v37 = vmul.f32 0.0625, %v191_v35  ;;  %v197_v38 = vpop.xlane.xlu2 %196  ;;  %v369_v34 = vadd.s32 48, %v332_v9 }
  0x8d   : > { %v209_v46 = vmul.f32 0.0625, %v197_v38 }
  0x8e   : > { %v232_v42 = vperm.slane %v205_v36, %v231_v30  ;;  %v240_v43 = vperm.slane %v207_v37, %v239_v31  ;;  %v363_v30 = vadd.s32 40, %v332_v9  ;;  %v351_v31 = vadd.s32 24, %v332_v9 }
  0x8f   : > { %v248_v53 = vperm.slane %v209_v46, %v247_v45 }
  0x90   : > { %v234_v47 = vsel %vm233_vm1, %v232_v42, %v230_v40 }
  0x91   : > { %v238_v48 = vsel %vm237_vm2, %v236_v44, %v234_v47 }
  0x92   : > { %v242_v50 = vsel %vm241_vm3, %v240_v43, %v238_v48 }
  0x93   : > { %v200_v54 = vpop.xlane.xlu0 %199  ;;  %v203_v55 = vpop.xlane.xlu1 %202  ;;  %v246_v58 = vsel %vm245_vm4, %v244_v49, %v242_v50 }
  0x94   : > { %v210_v56 = vmul.f32 0.0625, %v200_v54  ;;  %v211_v57 = vmul.f32 0.0625, %v203_v55  ;;  %v250_v61 = vsel %vm249_vm5, %v248_v53, %v246_v58 }
  0x96   : > { %v252_v59 = vperm.slane %v210_v56, %v251_v51  ;;  %v256_v60 = vperm.slane %v211_v57, %v255_v52 }
  0x98   : > { %v254_v62 = vsel %vm253_vm6, %v252_v59, %v250_v61 }
  0x99   : > { %v258_v63 = vsel %vm257_vm7, %v256_v60, %v254_v62 }
  0x9a   : > { %459 = vmatmul.msk.f32.vlgmr.msra.gmra.mxu0 %vm259_vm8, %v258_v63 }
 0x117   : > { %v279_v4 = vpop.f32.mrf.mxu0 }
 0x118   : > { %v282_v5 = vmax.f32 %v279_v4, 0.0 }
 0x11a   : > { %461 = vmatmul.msk.f32.vlgmr.msra.gmra.mxu1 %vm284_vm10, %v282_v5 }
 0x197   : > { %v309_v14 = vpop.f32.mrf.mxu1 }
 0x198   : > { %v312_v15 = vsub.f32 0.0, %v309_v14 }
 0x19a   : > { %v313_v16 = vmul.f32 1.442695, %v312_v15 }
 0x19c   : > { %483 = vpow2.f32 %v313_v16 }
 0x1a2   : > { %v484_v17 = vpop.eup %483 }
 0x1a3   : > { %v315_v18 = vadd.f32 1.0, %v484_v17 }
 0x1a5   : > { %485 = vrcp.f32 %v315_v18  ;;  %v327_v22 = vand.u32 2147483648, %v315_v18  ;;  %v325_v25 = vand.u32 2147483647, %v315_v18  ;;  %vm321_vm12 = vweird.f32 %v315_v18 }
 0x1a7   : > { %v328_v26 = vor.u32 1.1754944e-38, %v327_v22  ;;  %vm326_vm14 = vcmp.eq.f32.partialorder %v325_v25, 8.507059e+37 }
 0x1ab   : > { %v486_v19 = vpop.eup %485 }
 0x1ac   : > { %v317_v20 = vmul.f32 %v486_v19, %v315_v18  ;;  %vm322_vm11 = vweird.f32 %v486_v19 }
 0x1ad   : > { %vm323_vm13 = vmor %vm321_vm12, %vm322_vm11 }
 0x1ae   : > { %v318_v21 = vsub.f32 1.0, %v317_v20 }
 0x1b0   : > { %v319_v23 = vmul.f32 %v486_v19, %v318_v21 }
 0x1b2   : > { %v320_v24 = vadd.f32 %v486_v19, %v319_v23 }
 0x1b4   : > { %v324_v27 = vsel %vm323_vm13, %v486_v19, %v320_v24 }
 0x1b5   : > { %v329_v28 = vsel %vm326_vm14, %v328_v26, %v324_v27 }
 0x1b6   : > { %v330_v29 = vperm.slane %v329_v28, 0 }
 0x1b8   : > { %347 = vperm.xlu1 %476, %v330_v29   ;;  %341 = vperm.xlu0 %475, %v330_v29  }
 0x1b9   : > { %335 = vperm.xlu2 %474, %v330_v29  }
 0x1c0   : > { %479 = vset.pattern.permute.xlu1 %v363_v30  ;;  %482 = vset.pattern.permute.xlu0 %v375_v32 }
 0x1c1   : > { %477 = vset.pattern.permute.xlu2 %v351_v31 }
 0x1c8   : > { %365 = vperm.xlu1 %479, %v330_v29  }
 0x1c9   : > { %353 = vperm.xlu2 %477, %v330_v29  }
 0x1d0   : > { %481 = vset.pattern.permute.xlu1 %v375_v32 }
 0x1d1   : > { %478 = vset.pattern.permute.xlu2 %v357_v33 }
 0x1d8   : > { %377 = vperm.xlu1 %481, %v330_v29  }
 0x1d9   : > { %359 = vperm.xlu2 %478, %v330_v29  }
 0x1e1   : > { %480 = vset.pattern.permute.xlu2 %v369_v34 }
 0x1e9   : > { %371 = vperm.xlu2 %480, %v330_v29  }
 0x213   : > { %v336_v35 = vpop.permute.xlu2 %335 }
 0x214   : > { %v379_v36 = vmul.f32 %v336_v35, %v531_v0 }
 0x216   : > { %387 = vst.msk [vmem:[%s170_s11] sm:$0xff] %vm179_vm0, %v379_v36 }
 0x223   : > { %v354_v37 = vpop.permute.xlu2 %353 }
 0x224   : > { %v382_v38 = vmul.f32 %v354_v37, %v545_v7 }
 0x226   : > { %390 = vst.msk [vmem:[%s170_s11 + $0x18] sm:$0xff] %vm179_vm0, %v382_v38 }
 0x22a   : > { %v348_v39 = vpop.permute.xlu1 %347  ;;  %v342_v40 = vpop.permute.xlu0 %341 }
 0x22b   : > { %v381_v41 = vmul.f32 %v348_v39, %v533_v1  ;;  %v380_v42 = vmul.f32 %v342_v40, %v543_v6 }
 0x22d   : > { %389 = vst.msk [vmem:[%s170_s11 + $0x10] sm:$0xff] %vm179_vm0, %v381_v41 }
 0x22e   : > { %388 = vst.msk [vmem:[%s170_s11 + $0x8] sm:$0xff] %vm179_vm0, %v380_v42 }
 0x233   : > { %v360_v43 = vpop.permute.xlu2 %359 }
 0x234   : > { %v383_v0 = vmul.f32 %v360_v43, %v535_v2 }
 0x236   : > { %391 = vst.msk [vmem:[%s170_s11 + $0x20] sm:$0xff] %vm179_vm0, %v383_v0 }
 0x23a   : > { %v366_v44 = vpop.permute.xlu1 %365 }
 0x23b   : > { %v384_v7 = vmul.f32 %v366_v44, %v547_v8 }
 0x23d   : > { %392 = vst.msk [vmem:[%s170_s11 + $0x28] sm:$0xff] %vm179_vm0, %v384_v7 }
 0x243   : > { %v372_v45 = vpop.permute.xlu2 %371 }
 0x244   : > { %v385_v46 = vmul.f32 %v372_v45, %v555_v12 }
 0x246   : > { %393 = vst.msk [vmem:[%s170_s11 + $0x30] sm:$0xff] %vm179_vm0, %v385_v46 }
 0x24a   : > { %v378_v1 = vpop.permute.xlu1 %377 }
 0x24b   : > { %v386_v6 = vmul.f32 %v378_v1, %v557_v13 }
 0x24d   : > { %394 = vst.msk [vmem:[%s170_s11 + $0x38] sm:$0xff] %vm179_vm0, %v386_v6 }
 0x24e PF: > { %s13_s12 = sadd.s32 1, %s493_s12  }
 0x24f   : > { %p10_p4 = scmp.ge.s32.totalorder %s13_s12, 6  }
 0x251   :  { %12 = sbr.rel (!%p10_p4) target bundleno = 1 (0x1), region = 62 }

</bundles_post_ra>
